<compile_context>
chip_gen: v6e
topology: v6e:2x2x1
jax: 0.10.0
libtpu: 0.0.40
codegen_flags: <defaults>
</compile_context>

<pallas_src>
import functools

import numpy as np
import jax
import jax.numpy as jnp
from jax.experimental import pallas as pl
from jax.experimental.pallas import tpu as pltpu

LANE = 128


def _round_up(x, m):
    return ((x + m - 1) // m) * m


# ----------------------------------------------------------------------------
# Pallas kernels
# ----------------------------------------------------------------------------

def _mm_kernel(*refs, act, has_res, nk):
    """Tiled matmul over grid (M/tm, N/tn, K/tk); K innermost ("arbitrary").

    Accumulates in an f32 VMEM scratch (assign on k==0, add afterwards); on the
    final K step adds the folded-BN bias, optional fused residual, applies the
    activation and writes bf16 (or requested dtype) to the output block."""
    if has_res:
        a_ref, b_ref, c_ref, r_ref, o_ref, acc_ref = refs
    else:
        a_ref, b_ref, c_ref, o_ref, acc_ref = refs
        r_ref = None

    def epilogue(acc):
        y = acc + c_ref[...]
        if has_res:
            y = y + r_ref[...].astype(jnp.float32)
        if act == "relu":
            y = jnp.maximum(y, 0.0)
        elif act == "sigmoid":
            y = jax.nn.sigmoid(y)
        o_ref[...] = y.astype(o_ref.dtype)

    prod = jnp.dot(a_ref[...], b_ref[...], preferred_element_type=jnp.float32)

    if nk == 1:
        epilogue(prod)
    else:
        k = pl.program_id(2)

        @pl.when(k == 0)
        def _():
            acc_ref[...] = prod

        @pl.when(k > 0)
        def _():
            acc_ref[...] = acc_ref[...] + prod

        @pl.when(k == nk - 1)
        def _():
            epilogue(acc_ref[...])


def matmul_fused(a, pw, act, residual=None, out_dtype=jnp.bfloat16):
    """out[:M,:N] = act(a @ Wscaled + bias [+ residual]).

    `pw` holds a pre-padded bf16 weight (Kp, Np) with the BN scale folded into
    its columns, plus an f32 (1, Np) bias.  Activations / residual stream as
    bf16; accumulation is f32."""
    M, K = a.shape
    assert K == pw["K"], (K, pw["K"])
    Kp, Np = pw["w"].shape
    N = pw["N"]

    tm = min(256, _round_up(M, 16))           # bf16 min sublane tile is 16
    Mp = _round_up(M, tm)

    # Adaptive K tile: full K when it fits, else the largest 128-multiple
    # divisor <= 1024 (keeps weight tiles small enough for v7x 64 MiB VMEM).
    max_tk = min(Kp, 1024)
    tk = next(t for t in range(max_tk, 0, -128) if Kp % t == 0)
    nk = Kp // tk

    # N tile: lane-dense and big, but keep >= 2 parallel grid blocks where
    # possible so both v7x TensorCores get work (no effect on v5e/v6e).
    cands = [t for t in (512, 256, 128) if Np % t == 0]
    tn = cands[0]
    if (Mp // tm) * (Np // tn) < 2:
        for t in cands:
            if Np // t >= 2:
                tn = t
                break
    if (Mp // tm) * (Np // tn) < 2:
        half = Mp // 2
        if half >= 16 and half % 16 == 0:
            tm = half

    a_p = a.astype(jnp.bfloat16)
    if (Mp, Kp) != (M, K):
        a_p = jnp.pad(a_p, ((0, Mp - M), (0, Kp - K)))
    inputs = [a_p, pw["w"], pw["b"]]
    in_specs = [
        pl.BlockSpec((tm, tk), lambda i, j, k: (i, k)),
        # TODO(synk): pipeline_mode=pl.Buffered(3) on the weight stream helps
        # the weight-DMA-bound layers on v6e; kept default for compatibility.
        pl.BlockSpec((tk, tn), lambda i, j, k: (k, j)),
        pl.BlockSpec((1, tn), lambda i, j, k: (0, j)),
    ]
    has_res = residual is not None
    if has_res:
        r_p = residual.astype(jnp.bfloat16)
        if (Mp, Np) != (M, N):
            r_p = jnp.pad(r_p, ((0, Mp - M), (0, Np - N)))
        inputs.append(r_p)
        in_specs.append(pl.BlockSpec((tm, tn), lambda i, j, k: (i, j)))

    out_bytes = jnp.dtype(out_dtype).itemsize
    bytes_accessed = ((Mp * Kp + Kp * Np) * 2 + Np * 4
                      + Mp * Np * (out_bytes + (2 if has_res else 0)))
    out = pl.pallas_call(
        functools.partial(_mm_kernel, act=act, has_res=has_res, nk=nk),
        out_shape=jax.ShapeDtypeStruct((Mp, Np), out_dtype),
        grid_spec=pltpu.PrefetchScalarGridSpec(
            num_scalar_prefetch=0,
            grid=(Mp // tm, Np // tn, nk),
            in_specs=in_specs,
            out_specs=pl.BlockSpec((tm, tn), lambda i, j, k: (i, j)),
            scratch_shapes=[pltpu.VMEM((tm, tn), jnp.float32)],
        ),
        compiler_params=pltpu.CompilerParams(
            dimension_semantics=("parallel", "parallel", "arbitrary")),
        cost_estimate=pl.CostEstimate(
            flops=2 * Mp * Np * Kp,
            transcendentals=Mp * Np if act == "sigmoid" else 0,
            bytes_accessed=bytes_accessed),
    )(*inputs)
    if (Mp, Np) != (M, N):
        out = out[:M, :N]
    return out


def _se_gate_stats_kernel(x_ref, g_ref, o_ref, s_ref):
    # x: (1, HW, C), g: (1, 1, C).  Broadcast channel gate over the spatial dim
    # and emit [channel-mean, channel-max] of the gated result for the spatial
    # attention module in the same pass (no extra HBM read of x).
    y = x_ref[...].astype(jnp.float32) * g_ref[...].astype(jnp.float32)
    o_ref[...] = y.astype(o_ref.dtype)
    s_ref[...] = jnp.concatenate(
        [jnp.mean(y, axis=-1, keepdims=True),
         jnp.max(y, axis=-1, keepdims=True)], axis=-1).astype(s_ref.dtype)


def se_gate_with_stats(x, gate):
    B, H, W, C = x.shape
    xr = x.reshape(B, H * W, C)
    g = gate.reshape(B, 1, C)
    out, stats = pl.pallas_call(
        _se_gate_stats_kernel,
        out_shape=(jax.ShapeDtypeStruct((B, H * W, C), x.dtype),
                   jax.ShapeDtypeStruct((B, H * W, 2), jnp.bfloat16)),
        grid=(B,),
        in_specs=[pl.BlockSpec((1, H * W, C), lambda b: (b, 0, 0)),
                  pl.BlockSpec((1, 1, C), lambda b: (b, 0, 0))],
        out_specs=(pl.BlockSpec((1, H * W, C), lambda b: (b, 0, 0)),
                   pl.BlockSpec((1, H * W, 2), lambda b: (b, 0, 0))),
        compiler_params=pltpu.CompilerParams(
            dimension_semantics=("parallel",)),
    )(xr, g)
    return out.reshape(B, H, W, C), stats.reshape(B, H, W, 2)


def _sa_fused_kernel(x_ref, a_ref, w_ref, o_ref):
    # 7x7 spatial-attention conv (as matmul) + sigmoid + spatial gating fused:
    # the (M,1) attention map never hits HBM (lane-sparse store avoided).
    att = jnp.dot(a_ref[...], w_ref[...], preferred_element_type=jnp.float32)
    gate = jax.nn.sigmoid(att[:, 0:1])
    o_ref[...] = (x_ref[...].astype(jnp.float32) * gate).astype(o_ref.dtype)


def spatial_attention_apply(x, stats, p):
    """x <- x * sigmoid(conv7x7([mean,max])) in a single Pallas kernel."""
    B, H, W, C = x.shape
    cols, oh, ow = im2col(stats, 7, 1, 3)              # (B, H, W, 98)
    assert (oh, ow) == (H, W)
    M = B * H * W
    Mp = _round_up(M, 16)
    Kp = p["mm"]["w"].shape[0]                         # 128 (K=98 padded)
    a = cols.reshape(M, -1).astype(jnp.bfloat16)
    a = jnp.pad(a, ((0, Mp - M), (0, Kp - a.shape[1])))
    xr = x.reshape(M, C)
    if Mp != M:
        xr = jnp.pad(xr, ((0, Mp - M), (0, 0)))
    out = pl.pallas_call(
        _sa_fused_kernel,
        out_shape=jax.ShapeDtypeStruct((Mp, C), x.dtype),
    )(xr, a, p["mm"]["w"])
    if Mp != M:
        out = out[:M]
    return out.reshape(B, H, W, C)


def _gap_kernel(x_ref, o_ref):
    # x: (B, HW, C) -> (B, C) mean over spatial (f32 accumulate, bf16 out)
    o_ref[...] = jnp.mean(x_ref[...].astype(jnp.float32), axis=1
                          ).astype(o_ref.dtype)


def global_avg_pool(x):
    B, H, W, C = x.shape
    xr = x.reshape(B, H * W, C)
    return pl.pallas_call(
        _gap_kernel,
        out_shape=jax.ShapeDtypeStruct((B, C), x.dtype),
    )(xr)


def _max9_kernel(*refs):
    # running elementwise max over the 9 pooling taps
    o_ref = refs[-1]
    r = refs[0][...]
    for t in refs[1:-1]:
        r = jnp.maximum(r, t[...])
    o_ref[...] = r


def maxpool_3x3_s2_p1(x):
    # 3x3 / stride-2 / pad-1 max pool.  Input is post-ReLU (>= 0), so zero
    # padding is equivalent to -inf padding.  The nine shifted strided views
    # are passed as separate operands and reduced inside one Pallas kernel
    # (no 9x stacked HBM intermediate).
    # TODO(synk): do the strided window reads in-kernel from the padded input.
    B, H, W, C = x.shape
    xp = jnp.pad(x, ((0, 0), (1, 1), (1, 1), (0, 0)))
    oh = (H + 2 - 3) // 2 + 1
    ow = (W + 2 - 3) // 2 + 1
    taps = [xp[:, i:i + 2 * oh:2, j:j + 2 * ow:2, :].reshape(B * oh * ow, C)
            for i in range(3) for j in range(3)]
    out = pl.pallas_call(
        _max9_kernel,
        out_shape=jax.ShapeDtypeStruct((B * oh * ow, C), x.dtype),
    )(*taps)
    return out.reshape(B, oh, ow, C)


# ----------------------------------------------------------------------------
# Conv / blocks built on the Pallas kernels (glue: im2col, reshapes)
# ----------------------------------------------------------------------------

def im2col(x, k, stride, padding):
    """x: NHWC.  Returns (B, oh, ow, k*k*C) with K ordered (kh, kw, c)."""
    # TODO(synk): fuse im2col into the matmul kernel (shifted-window K axis)
    # to avoid the k*k-expanded HBM intermediate for 3x3/7x7 convs.
    if padding:
        x = jnp.pad(x, ((0, 0), (padding, padding), (padding, padding), (0, 0)))
    B, Hp, Wp, C = x.shape
    oh = (Hp - k) // stride + 1
    ow = (Wp - k) // stride + 1
    cols = []
    for i in range(k):
        for j in range(k):
            cols.append(x[:, i:i + stride * oh:stride, j:j + stride * ow:stride, :])
    return jnp.concatenate(cols, axis=-1), oh, ow


def conv_bn(x, p, stride, padding, act, residual=None):
    B = x.shape[0]
    cols, oh, ow = im2col(x, p["k"], stride, padding)
    a = cols.reshape(B * oh * ow, -1)
    out = matmul_fused(a, p["mm"], act, residual=residual)
    return out.reshape(B, oh, ow, -1)


def bottleneck(x, p):
    if p["downsample"] is not None:
        identity = conv_bn(x, p["downsample"], p["stride"], 0, "none")
    else:
        identity = x
    out = conv_bn(x, p["conv1"], 1, 0, "relu")
    out = conv_bn(out, p["conv2"], p["stride"], 1, "relu")
    B, H, W, C = identity.shape
    # residual add + ReLU fused into conv3's matmul epilogue (bf16 residual)
    out = conv_bn(out, p["conv3"], 1, 0, "relu",
                  residual=identity.reshape(B * H * W, C))
    return out


def se_block(x, p):
    y = global_avg_pool(x)                          # (B, C) bf16
    y = matmul_fused(y, p["fc1"], "relu")           # (B, C//16)
    y = matmul_fused(y, p["fc2"], "sigmoid")        # (B, C)
    # SE gating + channel mean/max stats for spatial attention in one kernel.
    return se_gate_with_stats(x, y)


# ----------------------------------------------------------------------------
# Deterministic parameter construction (synthetic weights, pre-padded bf16)
# ----------------------------------------------------------------------------

class KeyGen:
    def __init__(self, seed=0):
        self.key = jax.random.PRNGKey(seed)

    def __call__(self):
        self.key, sub = jax.random.split(self.key)
        return sub


def pack_matmul(w_mat, bias, scale=None):
    """Fold BN scale into the weight columns, pad K/N to 128 multiples, cast
    the weight to bf16; keep only a f32 (1, Np) bias stream for the epilogue."""
    K, N = w_mat.shape
    Kp = _round_up(K, LANE)
    Np = _round_up(N, LANE)
    w = w_mat.astype(jnp.float32)
    if scale is not None:
        w = w * scale.reshape(1, N).astype(jnp.float32)
    w = jnp.pad(w, ((0, Kp - K), (0, Np - N))).astype(jnp.bfloat16)
    b = jnp.pad(bias.reshape(1, N).astype(jnp.float32),
                ((0, 0), (0, Np - N)))
    return dict(w=w, b=b, K=K, N=N)


def make_conv_bn(kg, cin, cout, k):
    fan_in = cin * k * k
    w = jax.random.normal(kg(), (cout, cin, k, k), jnp.float32) / np.sqrt(fan_in)
    w_mat = jnp.transpose(w, (2, 3, 1, 0)).reshape(k * k * cin, cout)
    gamma = 1.0 + 0.1 * jax.random.normal(kg(), (cout,), jnp.float32)
    beta = 0.1 * jax.random.normal(kg(), (cout,), jnp.float32)
    mean = 0.1 * jax.random.normal(kg(), (cout,), jnp.float32)
    var = jnp.ones((cout,), jnp.float32)
    scale = gamma / jnp.sqrt(var + 1e-5)          # folded eval-mode BN
    bias = beta - mean * scale
    return dict(k=k, mm=pack_matmul(w_mat, bias, scale=scale))


def make_linear(kg, din, dout):
    w = jax.random.normal(kg(), (dout, din), jnp.float32) / np.sqrt(din)
    b = 0.01 * jax.random.normal(kg(), (dout,), jnp.float32)
    return pack_matmul(w.T, b)


def make_se(kg, channel, reduction=16):
    r = channel // reduction
    w1 = jax.random.normal(kg(), (r, channel), jnp.float32) / np.sqrt(channel)
    w2 = jax.random.normal(kg(), (channel, r), jnp.float32) / np.sqrt(r)
    return dict(fc1=pack_matmul(w1.T, jnp.zeros((r,), jnp.float32)),
                fc2=pack_matmul(w2.T, jnp.zeros((channel,), jnp.float32)))


def make_sa(kg):
    w = jax.random.normal(kg(), (1, 2, 7, 7), jnp.float32) / np.sqrt(2 * 49)
    w_mat = jnp.transpose(w, (2, 3, 1, 0)).reshape(98, 1)
    return dict(mm=pack_matmul(w_mat, jnp.zeros((1,), jnp.float32)))


def make_params(num_classes, seed=0):
    kg = KeyGen(seed)
    P = {}
    P["conv1"] = make_conv_bn(kg, 3, 64, 7)

    def make_layer(cin, mid, blocks, stride):
        layer = []
        cout = mid * 4
        for b in range(blocks):
            s = stride if b == 0 else 1
            blk = dict(
                conv1=make_conv_bn(kg, cin if b == 0 else cout, mid, 1),
                conv2=make_conv_bn(kg, mid, mid, 3),
                conv3=make_conv_bn(kg, mid, cout, 1),
                downsample=(make_conv_bn(kg, cin if b == 0 else cout, cout, 1)
                            if b == 0 else None),
                stride=s,
            )
            layer.append(blk)
        return layer

    P["layer1"] = make_layer(64, 64, 3, 1)
    P["layer2"] = make_layer(256, 128, 4, 2)
    P["layer3"] = make_layer(512, 256, 6, 2)
    P["layer4"] = make_layer(1024, 512, 3, 2)

    for i, c in enumerate([256, 512, 1024, 2048], start=1):
        P[f"se{i}"] = make_se(kg, c)
        P[f"sa{i}"] = make_sa(kg)

    P["mlp1"] = make_linear(kg, 2048, 2048)
    P["mlp2"] = make_linear(kg, 2048, 1024)
    P["fc"] = make_linear(kg, 1024, num_classes)
    return P


# ----------------------------------------------------------------------------
# Forward pass (eval mode: BN uses running stats, Dropout is identity)
# ----------------------------------------------------------------------------

def forward(params, x_nchw):
    # NCHW -> NHWC, bf16 activation stream end-to-end
    x = jnp.transpose(x_nchw, (0, 2, 3, 1)).astype(jnp.bfloat16)

    # layer0: conv7x7/s2 + BN + ReLU + maxpool3x3/s2
    x = conv_bn(x, params["conv1"], 2, 3, "relu")
    x = maxpool_3x3_s2_p1(x)

    for i, lname in enumerate(["layer1", "layer2", "layer3", "layer4"], start=1):
        for blk in params[lname]:
            x = bottleneck(x, blk)
        x, stats = se_block(x, params[f"se{i}"])
        x = spatial_attention_apply(x, stats, params[f"sa{i}"])

    y = global_avg_pool(x)                                        # (B, 2048)
    # TODO(synk): Dropout(p=0.5) layers are identity in eval mode.
    y = matmul_fused(y, params["mlp1"], "relu")
    y = matmul_fused(y, params["mlp2"], "relu")
    # TODO(synk): fp8 weights for the big MLP / layer3-4 matrices on v7x.
    y = matmul_fused(y, params["fc"], "none", out_dtype=jnp.float32)
    return y


# ----------------------------------------------------------------------------

if __name__ == "__main__":
    num_classes = 10
    params = make_params(num_classes, seed=0)

    key = jax.random.PRNGKey(0)
    x = jax.random.normal(key, (2, 3, 32, 32), jnp.float32)   # NCHW like PyTorch

    out = forward(params, x)
    out = jax.block_until_ready(out)
    assert out.shape == (2, num_classes), out.shape
    assert bool(jnp.all(jnp.isfinite(out)))
    print("KERNEL_OK")
</pallas_src>

<mosaic_0001>
module attributes {stable_mosaic.version = 11 : i64} {
  func.func @_mm_kernel(%arg0: i32, %arg1: i32, %arg2: i32, %arg3: memref<256x256xbf16, #tpu.memory_space<vmem>>, %arg4: memref<256x128xbf16, #tpu.memory_space<vmem>>, %arg5: memref<1x128xf32, #tpu.memory_space<vmem>>, %arg6: memref<256x128xbf16, #tpu.memory_space<vmem>>, %arg7: memref<256x128xf32, #tpu.memory_space<vmem>>) attributes {dimension_semantics = [#tpu.dimension_semantics<parallel>, #tpu.dimension_semantics<parallel>, #tpu.dimension_semantics<arbitrary>], iteration_bounds = array<i64: 2, 1, 1>, scalar_prefetch = 0 : i64, scratch_operands = 1 : i64, tpu.core_type = #tpu.core_type<tc>, window_params = [{transform_indices = @transform_0, window_bounds = array<i64: 256, 256>}, {transform_indices = @transform_1, window_bounds = array<i64: 256, 128>}, {transform_indices = @transform_2, window_bounds = array<i64: 1, 128>}, {transform_indices = @transform_3, window_bounds = array<i64: 256, 128>}]} {
    %c0 = arith.constant 0 : index
    %c0_0 = arith.constant 0 : index
    %0 = vector.load %arg3[%c0, %c0_0] : memref<256x256xbf16, #tpu.memory_space<vmem>>, vector<256x256xbf16>
    %c0_1 = arith.constant 0 : index
    %c0_2 = arith.constant 0 : index
    %1 = vector.load %arg4[%c0_1, %c0_2] : memref<256x128xbf16, #tpu.memory_space<vmem>>, vector<256x128xbf16>
    %cst = arith.constant dense<0.000000e+00> : vector<256x128xf32>
    %2 = tpu.matmul %0, %1, %cst {dimension_numbers = #tpu.dot_dimension_numbers<[1], [0], [0], [1], [0, 0, 1, 1], [], []>} : vector<256x256xbf16>, vector<256x128xbf16>, vector<256x128xf32> -> vector<256x128xf32>
    %c0_3 = arith.constant 0 : index
    %c0_4 = arith.constant 0 : index
    %3 = vector.load %arg5[%c0_3, %c0_4] : memref<1x128xf32, #tpu.memory_space<vmem>>, vector<1x128xf32>
    %4 = vector.broadcast %3 : vector<1x128xf32> to vector<256x128xf32>
    %5 = arith.addf %2, %4 : vector<256x128xf32>
    %cst_5 = arith.constant 0.000000e+00 : f32
    %6 = vector.broadcast %cst_5 : f32 to vector<256x128xf32>
    %7 = arith.maximumf %5, %6 : vector<256x128xf32>
    %8 = arith.truncf %7 : vector<256x128xf32> to vector<256x128xbf16>
    %c0_6 = arith.constant 0 : index
    %c0_7 = arith.constant 0 : index
    %9 = vector.load %arg6[%c0_6, %c0_7] : memref<256x128xbf16, #tpu.memory_space<vmem>>, vector<256x128xbf16>
    tpu.vector_store %arg6[%c0_6, %c0_7], %8 {strides = array<i32>} : memref<256x128xbf16, #tpu.memory_space<vmem>>, vector<256x128xbf16>,
    return
  }
  func.func @transform_0(%arg0: i32, %arg1: i32, %arg2: i32) -> (i32, i32) {
    %c0_i32 = arith.constant 0 : i32
    return %arg0, %arg2 : i32, i32
  }
  func.func @transform_1(%arg0: i32, %arg1: i32, %arg2: i32) -> (i32, i32) {
    %c0_i32 = arith.constant 0 : i32
    return %arg2, %arg1 : i32, i32
  }
  func.func @transform_2(%arg0: i32, %arg1: i32, %arg2: i32) -> (i32, i32) {
    %c0_i32 = arith.constant 0 : i32
    %c0_i32_0 = arith.constant 0 : i32
    return %c0_i32, %arg1 : i32, i32
  }
  func.func @transform_3(%arg0: i32, %arg1: i32, %arg2: i32) -> (i32, i32) {
    %c0_i32 = arith.constant 0 : i32
    return %arg0, %arg1 : i32, i32
  }
}

</mosaic_0001>

<bundles_post_ra>
// kernel: tpu_custom_call.1
= control target key start
LH: loop header
LB: loop body
LE: loop exit
PB: predicated region body
PF: predicated region fallthrough
CT: control target
= control target key end

     0   :  { %8 = vsyncpa [#allocation4], 0  ;;  %s2012_s0 = inlined_call_operand.hbm [shape: bf16[512,256], index: 0, kind: input, shape index: {}]   ;;  %s2013_s1 = inlined_call_operand.hbm [shape: bf16[256,128], index: 1, kind: input, shape index: {}]   ;;  %s2014_s2 = inlined_call_operand.vmem [shape: f32[1,128], index: 2, kind: input, shape index: {}]   ;;  %s2015_s3 = inlined_call_operand.hbm [shape: bf16[512,128], index: 3, kind: output, shape index: {}]  }
   0x1   :  { %10 = vsyncpa [#allocation4 + $0x1], 0 }
   0x2   :  { %11 = vsyncpa [#allocation7], 0 }
   0x3   :  { %12 = vsyncpa [#allocation5], 0 }
   0x4   :  { %14 = vsyncpa [#allocation5 + $0x1], 0  ;;  %s1740_s12 = smov 0   ;;  %s1742_s13 = smov 0  }
   0x5   :  { %s1744_s14 = smov 0   ;;  %s1746_s15 = smov 0  }
   0x6   :  { %s1748_s16 = smov 0   ;;  %s1750_s17 = smov 0  }
   0x7 LB: > { %s1070_s18 = sadd.s32 4294967295, %s1709_s17   ;;  %s1071_s19 = sadd.s32 4294967294, %s1709_s17   ;;  %s1709_s17 = sphi %s1750_s17, %s20_s17   ;;  %s1705_s16 = sphi %s1748_s16, %s2033_s16   ;;  %s1701_s15 = sphi %s1746_s15, %s2032_s15   ;;  %s1697_s14 = sphi %s1744_s14, %s2031_s14   ;;  %s1693_s13 = sphi %s1742_s13, %s2030_s13   ;;  %s1689_s12 = sphi %s1740_s12, %s2029_s12  }
   0x8   : > { %p61_p0 = scmp.ne.s32.totalorder %s1693_s13, %s1689_s12  ;;  %p1774_p1 = scmp.eq.s32.totalorder %s1070_s18, 0 }
   0x9   : > { %p1778_p2 = scmp.eq.s32.totalorder %s1070_s18, 1  ;;  %p147_p3 = scmp.eq.s32.totalorder %s1071_s19, 1 }
   0xa   : > { %p1784_p4 = por %p1774_p1, %p61_p0  ;;  %p1072_p5 = scmp.ge.s32.totalorder %s1709_s17, 1 }
   0xb   : > { %p1789_p6 = por %p147_p3, %p61_p0  ;;  %p154_p7 = scmp.lt.s32.totalorder %s1709_s17, 3 }
   0xc   : > { %s2019_s22 = scalar_select %p1784_p4, 1, 0 }
   0xd   : > { %s2020_s23 = scalar_select %p1789_p6, 1, 0 }
   0xe   : > { %p1794_p8 = pnand %p1072_p5, %p154_p7  ;;  %s1711_s25 = smov [#allocation6]  }
   0xf   : > { %s170_s26 = sshll.u32 %s1711_s25, 4  ;;  %s39_s28 = sadd.s32 1, %s1705_s16  ;;  %s171_s26 = int_to_ptr.vmem [resolvable:$true] %s170_s26 }
  0x10   : > { %p1436_p9 = pneg %p1794_p8  ;;  %s1582_s29 = scalar_lea.vmem %s171_s26, 2048 }
  0x11   : > { %p1583_p13 = scmp.ne.s32.totalorder %s171_s26, %s1582_s29  ;;  %p1590_p5 = scmp.lt.s32.totalorder %s171_s26, %s171_s26 }
  0x12   : > { %p1803_p11 = pnand %p1436_p9, %p1774_p1  ;;  %p1591_p7 = scmp.lt.s32.totalorder %s1582_s29, %s1582_s29 }
  0x14   : > { %p1573_p12 = pneg %p1803_p11  ;;  %p1592_p6 = por %p1591_p7, %p1590_p5 }
  0x16   : > { %p1585_p0 = pnand %p1583_p13, %p1573_p12 }
  0x18   : > { %p1586_p3 = pneg %p1585_p0 }
  0x1a   : > { %p1593_p4 = pnand %p1592_p6, %p1586_p3 }
  0x1c   : > { %1596 = shalt.err (!%p1593_p4)
}
  0x1d   : > { %s1712_s30 = smov 64   ;;  %s1713_s4 = smov 4  }
  0x1e   : > { %1439 = dma.hbm_to_vmem [thread:$0]  (!%p1803_p11), %s2013_s1, 2048, %s171_s26, [#allocation7], %s1712_s30, %s1712_s30, %s1713_s4  }
  0x1f   : > { %p41_p6 = scmp.ge.s32.totalorder %s39_s28, 2  ;;  %s48_s7 = sadd.s32 1, %s1697_s14 }
  0x20   : > { %p55_p4 = scmp.ne.s32.totalorder %s1697_s14, %s1693_s13  ;;  %p56_p9 = scmp.eq.s32.totalorder %s1709_s17, 0 }
  0x21   : > { %s2035_s28 = smov (%p41_p6, %s39_s28), 0  ;;  %p1449_p0 = scmp.lt.s32.totalorder %s1709_s17, 2 }
  0x22   : > { %p1821_p12 = por %p56_p9, %p55_p4  ;;  %p1827_p13 = por %p1778_p2, %p55_p4 }
  0x23   : > { %s43_s10 = ssub.s32 %s1705_s16, %s2035_s28  ;;  %s190_s11 = sand.u32 1, %s1697_s14  }
  0x24   : > { %p46_p11 = scmp.eq.s32.totalorder %s43_s10, 0  ;;  %s1076_s18 = sshll.u32 %s190_s11, 8 }
  0x25   : > { %s1171_s25 = sshll.u32 %s1705_s16, 12  ;;  %s194_s30 = scalar_lea.vmem [#allocation3], %s1076_s18 }
  0x26   : > { %s1836_s19 = scalar_select %p46_p11, %s1697_s14, %s48_s7  }
  0x27   : > { %s203_s29 = scalar_lea.hbm %s2012_s0, %s1171_s25  ;;  %s204_s4 = sshll.u32 %s194_s30, 4  ;;  %s205_s4 = int_to_ptr.vmem [resolvable:$true] %s204_s4 }
  0x28   : > { %p1844_p2 = pnand %p1449_p0, %p1821_p12  ;;  %s191_s5 = scalar_lea.sflag [#allocation4], %s190_s11 }
  0x29   : > { %s1610_s6 = scalar_lea.vmem %s205_s4, 4096  ;;  %s1714_s7 = smov [#allocation3]  }
  0x2a   : > { %p1599_p3 = pneg %p1844_p2  ;;  %p1611_p5 = scmp.ne.s32.totalorder %s205_s4, %s1610_s6 }
  0x2b   : > { %s1615_s10 = sshll.u32 %s1714_s7, 4  ;;  %s1616_s10 = int_to_ptr.vmem [resolvable:$false] %s1615_s10 }
  0x2c   : > { %p1613_p7 = pnand %p1611_p5, %p1599_p3  ;;  %s1617_s25 = scalar_lea.vmem %s1616_s10, 8192 }
  0x2d   : > { %p1618_p4 = scmp.lt.s32.totalorder %s205_s4, %s1616_s10  ;;  %p1619_p9 = scmp.lt.s32.totalorder %s1617_s25, %s1610_s6 }
  0x2e   : > { %p1614_p6 = pneg %p1613_p7 }
  0x2f   : > { %p1620_p11 = por %p1619_p9, %p1618_p4 }
  0x31   : > { %p1621_p10 = pnand %p1620_p11, %p1614_p6 }
  0x33   : > { %1624 = shalt.err (!%p1621_p10)
}
  0x34   : > { %s1715_s8 = smov 128   ;;  %s1716_s18 = smov 8  }
  0x35   : > { %1443 = dma.hbm_to_vmem [thread:$0]  (!%p1844_p2), %s203_s29, 4096, %s205_s4, %s191_s5, %s1715_s8, %s1715_s8, %s1716_s18  }
  0x36   : > { %216 = sbr.rel (%p1794_p8) target bundleno = 372 (0x174), region = 32  ;;  %s1855_s11 = sand.u32 (!%p1794_p8), 1, %s1693_s13  }
  0x37   : > { %s1081_s26 = sshll.u32 (!%p1794_p8), %s1855_s11, 8  ;;  %s219_s27 = scalar_lea.sflag (!%p1794_p8), [#allocation4], %s1855_s11 }
  0x38   : > { %s1859_s30 = scalar_lea.vmem (!%p1794_p8), [#allocation3], %s1081_s26  ;;  %p2026_p12 = scmp.ne.s32.totalorder (!%p1794_p8), %s2019_s22, 0 }
  0x3b   : > { %1676 = dma.done.wait (%p2026_p12), %s219_s27, 4096  }
  0x3c   : > { %1678 = vsyncadd (%p2026_p12), %s219_s27, 4294963200 }
  0x3d   : > { %1680 = dma.done.wait (%p1774_p1), [#allocation7], 2048  }
  0x3e   : > { %1682 = vsyncadd (%p1774_p1), [#allocation7], 4294965248  ;;  %v1507_v0 = vld [vmem:[#allocation6 + $0x78] sm:$0xff]   ;;  %v1509_v2 = vld [vmem:[#allocation6 + $0x70] sm:$0xff]   ;;  %s1083_s24 = sshll.u32 %s1855_s11, 7  ;;  %s1204_s4 = sshll.u32 %s1701_s15, 11 }
  0x3f   : > { %v1508_v1 = vld [vmem:[#allocation6 + $0x38] sm:$0xff]   ;;  %1300 = vmatprep.subr.bf16.mxu0 %v1507_v0  ;;  %1412 = vmatprep.subr.bf16.mxu1 %v1507_v0  ;;  %v1510_v3 = vld [vmem:[#allocation6 + $0x30] sm:$0xff]   ;;  %v1511_v4 = vld [vmem:[#allocation6 + $0x68] sm:$0xff]   ;;  %s1913_s29 = scalar_lea.vmem [#allocation8], %s1083_s24  ;;  %s1960_s7 = scalar_lea.hbm %s2015_s3, %s1204_s4 }
  0x40   : > { %1301 = vmatpush3.bf16.msra.mxu0 %v1508_v1  ;;  %1420 = vmatpush3.bf16.msra.mxu1 %v1508_v1  ;;  %v1512_v5 = vld [vmem:[#allocation6 + $0x28] sm:$0xff]   ;;  %v1513_v6 = vld [vmem:[#allocation6 + $0x60] sm:$0xff]   ;;  %v1515_v8 = vld [vmem:[#allocation6 + $0x58] sm:$0xff]   ;;  %s955_s21 = sshll.u32 %s1913_s29, 4  ;;  %s941_s15 = scalar_lea.sflag [#allocation5], %s1855_s11  ;;  %s1962_s21 = int_to_ptr.vmem [resolvable:$true] %s955_s21 }
  0x41   : > { %1302 = vmatprep.subr.bf16.mxu0 %v1509_v2  ;;  %1413 = vmatprep.subr.bf16.mxu1 %v1509_v2  ;;  %v1514_v7 = vld [vmem:[#allocation6 + $0x20] sm:$0xff]   ;;  %v1516_v9 = vld [vmem:[#allocation6 + $0x18] sm:$0xff]   ;;  %v1517_v10 = vld [vmem:[#allocation6 + $0x50] sm:$0xff]   ;;  %s1625_s10 = scalar_lea.vmem %s1962_s21, 2048  ;;  %s1717_s25 = smov [#allocation8]  }
  0x42   : > { %v1525_v11 = vld [vmem:[%s1859_s30 + $0x4] ss:$8 sps:$4 sm:$0xff]   ;;  %v1518_v13 = vld [vmem:[#allocation6 + $0x10] sm:$0xff]   ;;  %v1523_v18 = vld [vmem:[%s1859_s30] ss:$8 sps:$4 sm:$0xff]   ;;  %p1626_p1 = scmp.ne.s32.totalorder %s1962_s21, %s1625_s10  ;;  %s1629_s8 = sshll.u32 %s1717_s25, 4  ;;  %s1630_s8 = int_to_ptr.vmem [resolvable:$false] %s1629_s8 }
  0x43   : > { %v1528_v12 = vld [vmem:[%s1859_s30 + $0x84] ss:$8 sps:$4 sm:$0xff]   ;;  %619 = vmatprep.mubr.bf16.mxu0 %v1525_v11  ;;  %v1526_v19 = vld [vmem:[%s1859_s30 + $0x80] ss:$8 sps:$4 sm:$0xff]   ;;  %v1529_v20 = vld [vmem:[%s1859_s30 + $0x14] ss:$8 sps:$4 sm:$0xff]   ;;  %p1632_p0 = scmp.lt.s32.totalorder %s1962_s21, %s1630_s8 }
  0x44   : > { %1303 = vmatpush3.bf16.msra.mxu0 %v1510_v3  ;;  %1421 = vmatpush3.bf16.msra.mxu1 %v1510_v3  ;;  %v1519_v14 = vld [vmem:[#allocation6 + $0x48] sm:$0xff]   ;;  %v1521_v16 = vld [vmem:[#allocation6 + $0x40] sm:$0xff]   ;;  %v1531_v21 = vld [vmem:[%s1859_s30 + $0x94] ss:$8 sps:$4 sm:$0xff]   ;;  %p1627_p8 = pnand %p1626_p1, %p1827_p13  ;;  %s1631_s18 = scalar_lea.vmem %s1630_s8, 4096 }
  0x45   : > { %1304 = vmatprep.subr.bf16.mxu0 %v1511_v4  ;;  %1414 = vmatprep.subr.bf16.mxu1 %v1511_v4  ;;  %v1520_v15 = vld [vmem:[#allocation6 + $0x8] sm:$0xff]   ;;  %v1522_v17 = vld [vmem:[#allocation6] sm:$0xff]   ;;  %v1533_v22 = vld [vmem:[%s1859_s30 + $0x10] ss:$8 sps:$4 sm:$0xff]   ;;  %p1633_p2 = scmp.lt.s32.totalorder %s1631_s18, %s1625_s10 }
  0x46   : > { %683 = vmatprep.mubr.bf16.mxu1 %v1528_v12  ;;  %v1534_v23 = vld [vmem:[%s1859_s30 + $0x90] ss:$8 sps:$4 sm:$0xff]   ;;  %v1535_v24 = vld [vmem:[%s1859_s30 + $0x24] ss:$8 sps:$4 sm:$0xff]   ;;  %v1539_v26 = vld [vmem:[%s1859_s30 + $0x20] ss:$8 sps:$4 sm:$0xff]   ;;  %p1628_p10 = pneg %p1627_p8 }
  0x47   : > { %v1537_v25 = vld [vmem:[%s1859_s30 + $0xa4] ss:$8 sps:$4 sm:$0xff]   ;;  %v1540_v27 = vld [vmem:[%s1859_s30 + $0xa0] ss:$8 sps:$4 sm:$0xff]   ;;  %v1541_v28 = vld [vmem:[%s1859_s30 + $0x34] ss:$8 sps:$4 sm:$0xff]   ;;  %p1634_p3 = por %p1633_p2, %p1632_p0 }
  0x48   : > { %1305 = vmatpush3.bf16.msra.mxu0 %v1512_v5  ;;  %1422 = vmatpush3.bf16.msra.mxu1 %v1512_v5  ;;  %v1543_v29 = vld [vmem:[%s1859_s30 + $0xb4] ss:$8 sps:$4 sm:$0xff]   ;;  %v1545_v30 = vld [vmem:[%s1859_s30 + $0x30] ss:$8 sps:$4 sm:$0xff]   ;;  %v1547_v32 = vld [vmem:[%s1859_s30 + $0x44] ss:$8 sps:$4 sm:$0xff]  }
  0x49   : > { %1306 = vmatprep.subr.bf16.mxu0 %v1513_v6  ;;  %1415 = vmatprep.subr.bf16.mxu1 %v1513_v6  ;;  %v1546_v31 = vld [vmem:[%s1859_s30 + $0xb0] ss:$8 sps:$4 sm:$0xff]   ;;  %v1549_v33 = vld [vmem:[%s1859_s30 + $0xc4] ss:$8 sps:$4 sm:$0xff]   ;;  %v1551_v34 = vld [vmem:[%s1859_s30 + $0x40] ss:$8 sps:$4 sm:$0xff]   ;;  %p1635_p5 = pnand %p1634_p3, %p1628_p10 }
  0x4a   : > { %v1552_v35 = vld [vmem:[%s1859_s30 + $0xc0] ss:$8 sps:$4 sm:$0xff]   ;;  %v1553_v36 = vld [vmem:[%s1859_s30 + $0x54] ss:$8 sps:$4 sm:$0xff]   ;;  %v1557_v38 = vld [vmem:[%s1859_s30 + $0x50] ss:$8 sps:$4 sm:$0xff]  }
  0x4b   : > { %v1555_v37 = vld [vmem:[%s1859_s30 + $0xd4] ss:$8 sps:$4 sm:$0xff]   ;;  %v1558_v39 = vld [vmem:[%s1859_s30 + $0xd0] ss:$8 sps:$4 sm:$0xff]   ;;  %v1559_v40 = vld [vmem:[%s1859_s30 + $0x64] ss:$8 sps:$4 sm:$0xff]  }
  0x4c   : > { %1307 = vmatpush3.bf16.msra.mxu0 %v1514_v7  ;;  %1423 = vmatpush3.bf16.msra.mxu1 %v1514_v7  ;;  %v1561_v41 = vld [vmem:[%s1859_s30 + $0xe4] ss:$8 sps:$4 sm:$0xff]   ;;  %v1563_v42 = vld [vmem:[%s1859_s30 + $0x60] ss:$8 sps:$4 sm:$0xff]   ;;  %v1565_v44 = vld [vmem:[%s1859_s30 + $0x74] ss:$8 sps:$4 sm:$0xff]  }
  0x4d   : > { %1308 = vmatprep.subr.bf16.mxu0 %v1515_v8  ;;  %1416 = vmatprep.subr.bf16.mxu1 %v1515_v8  ;;  %v1564_v43 = vld [vmem:[%s1859_s30 + $0xe0] ss:$8 sps:$4 sm:$0xff]   ;;  %v1567_v45 = vld [vmem:[%s1859_s30 + $0xf4] ss:$8 sps:$4 sm:$0xff]   ;;  %v1569_v46 = vld [vmem:[%s1859_s30 + $0x70] ss:$8 sps:$4 sm:$0xff]  }
  0x4e   : > { %v1570_v47 = vld [vmem:[%s1859_s30 + $0xf0] ss:$8 sps:$4 sm:$0xff]   ;;  %v1904_v52 = vld [vmem:[%s2014_s2] ss:$0 sm:$0xff] }
  0x50   : > { %1309 = vmatpush3.bf16.msra.mxu0 %v1516_v9  ;;  %1424 = vmatpush3.bf16.msra.mxu1 %v1516_v9 }
  0x51   : > { %1310 = vmatprep.subr.bf16.mxu0 %v1517_v10  ;;  %1417 = vmatprep.subr.bf16.mxu1 %v1517_v10 }
  0x54   : > { %1311 = vmatpush3.bf16.msra.mxu0 %v1518_v13  ;;  %1425 = vmatpush3.bf16.msra.mxu1 %v1518_v13 }
  0x55   : > { %1312 = vmatprep.subr.bf16.mxu0 %v1519_v14  ;;  %1418 = vmatprep.subr.bf16.mxu1 %v1519_v14 }
  0x58   : > { %1313 = vmatpush3.bf16.msra.mxu0 %v1520_v15  ;;  %1426 = vmatpush3.bf16.msra.mxu1 %v1520_v15 }
  0x59   : > { %1314 = vmatprep.subr.bf16.mxu0 %v1521_v16  ;;  %1419 = vmatprep.subr.bf16.mxu1 %v1521_v16 }
  0x5c   : > { %1315 = vmatpush3.bf16.msra.mxu0 %v1522_v17  ;;  %1427 = vmatpush3.bf16.msra.mxu1 %v1522_v17 }
  0x5f   : > { %620 = vmatmul.mubr.bf16.vlgmr.msra.gmra.mxu0 %v1523_v18  ;;  %684 = vmatmul.mubr.bf16.vlgmr.msra.gmra.mxu1 %v1526_v19 }
  0x60   : > { %627 = vmatprep.mubr.bf16.mxu0 %v1529_v20  ;;  %691 = vmatprep.mubr.bf16.mxu1 %v1531_v21 }
  0x67   : > { %628 = vmatmul.mubr.bf16.gmra.mxu0 %v1533_v22  ;;  %692 = vmatmul.mubr.bf16.gmra.mxu1 %v1534_v23 }
  0x68   : > { %635 = vmatprep.mubr.bf16.mxu0 %v1535_v24  ;;  %699 = vmatprep.mubr.bf16.mxu1 %v1537_v25 }
  0x6f   : > { %636 = vmatmul.mubr.bf16.gmra.mxu0 %v1539_v26  ;;  %700 = vmatmul.mubr.bf16.gmra.mxu1 %v1540_v27 }
  0x70   : > { %643 = vmatprep.mubr.bf16.mxu0 %v1541_v28  ;;  %707 = vmatprep.mubr.bf16.mxu1 %v1543_v29 }
  0x77   : > { %644 = vmatmul.mubr.bf16.gmra.mxu0 %v1545_v30  ;;  %708 = vmatmul.mubr.bf16.gmra.mxu1 %v1546_v31 }
  0x78   : > { %651 = vmatprep.mubr.bf16.mxu0 %v1547_v32  ;;  %715 = vmatprep.mubr.bf16.mxu1 %v1549_v33 }
  0x7f   : > { %652 = vmatmul.mubr.bf16.gmra.mxu0 %v1551_v34  ;;  %716 = vmatmul.mubr.bf16.gmra.mxu1 %v1552_v35 }
  0x80   : > { %659 = vmatprep.mubr.bf16.mxu0 %v1553_v36  ;;  %723 = vmatprep.mubr.bf16.mxu1 %v1555_v37 }
  0x87   : > { %660 = vmatmul.mubr.bf16.gmra.mxu0 %v1557_v38  ;;  %724 = vmatmul.mubr.bf16.gmra.mxu1 %v1558_v39 }
  0x88   : > { %667 = vmatprep.mubr.bf16.mxu0 %v1559_v40  ;;  %731 = vmatprep.mubr.bf16.mxu1 %v1561_v41 }
  0x8f   : > { %668 = vmatmul.mubr.bf16.gmra.mxu0 %v1563_v42  ;;  %732 = vmatmul.mubr.bf16.gmra.mxu1 %v1564_v43 }
  0x90   : > { %675 = vmatprep.mubr.bf16.mxu0 %v1565_v44  ;;  %739 = vmatprep.mubr.bf16.mxu1 %v1567_v45 }
  0x97   : > { %676 = vmatmul.mubr.bf16.gmra.mxu0 %v1569_v46  ;;  %740 = vmatmul.mubr.bf16.gmra.mxu1 %v1570_v47 }
 0x11f   : > { %v1316_v48 = vpop.f32.mrf.mxu0  ;;  %v1364_v49 = vpop.f32.mrf.mxu1 }
 0x121   : > { %v1317_v50 = vpop.f32.mrf.mxu0  ;;  %v1365_v51 = vpop.f32.mrf.mxu1 }
 0x122   : > { %v1318_v53 = vadd.f32 %v1317_v50, %v1316_v48  ;;  %v1366_v54 = vadd.f32 %v1365_v51, %v1364_v49 }
 0x123   : > { %v1319_v55 = vpop.f32.mrf.mxu0  ;;  %v1367_v56 = vpop.f32.mrf.mxu1 }
 0x124   : > { %v622_v57 = vadd.f32 %v1318_v53, %v1904_v52  ;;  %v686_v58 = vadd.f32 %v1366_v54, %v1904_v52 }
 0x125   : > { %v1320_v59 = vpop.f32.mrf.mxu0  ;;  %v1368_v60 = vpop.f32.mrf.mxu1 }
 0x126   : > { %v1321_v61 = vadd.f32 %v1320_v59, %v1319_v55  ;;  %v1369_v62 = vadd.f32 %v1368_v60, %v1367_v56  ;;  %v748_v3 = vmax.f32 %v622_v57, 0.0  ;;  %v764_v4 = vmax.f32 %v686_v58, 0.0 }
 0x127   : > { %v1322_v63 = vpop.f32.mrf.mxu0  ;;  %v1370_v0 = vpop.f32.mrf.mxu1 }
 0x128   : > { %v625_v1 = vadd.f32 %v1321_v61, %v1904_v52  ;;  %v689_v2 = vadd.f32 %v1369_v62, %v1904_v52 }
 0x129   : > { %v1323_v5 = vpop.f32.mrf.mxu0  ;;  %v1371_v6 = vpop.f32.mrf.mxu1 }
 0x12a   : > { %v749_v7 = vmax.f32 %v625_v1, 0.0  ;;  %v765_v8 = vmax.f32 %v689_v2, 0.0  ;;  %v1324_v9 = vadd.f32 %v1323_v5, %v1322_v63  ;;  %v1372_v10 = vadd.f32 %v1371_v6, %v1370_v0 }
 0x12b   : > { %v1325_v11 = vpop.f32.mrf.mxu0  ;;  %v1373_v12 = vpop.f32.mrf.mxu1 }
 0x12c   : > { %v1208_v13 = vpack.c.bf16 %v749_v7, %v748_v3  ;;  %v1248_v14 = vpack.c.bf16 %v765_v8, %v764_v4  ;;  %v630_v15 = vadd.f32 %v1324_v9, %v1904_v52  ;;  %v694_v16 = vadd.f32 %v1372_v10, %v1904_v52 }
 0x12d   : > { %v1326_v17 = vpop.f32.mrf.mxu0  ;;  %v1374_v18 = vpop.f32.mrf.mxu1 }
 0x12e   : > { %1209 = vst [vmem:[%s1913_s29] sm:$0xff] %v1208_v13   ;;  %1292 = vst [vmem:[%s1913_s29 + $0x40] sm:$0xff] %v1248_v14   ;;  %v1327_v19 = vadd.f32 %v1326_v17, %v1325_v11  ;;  %v1375_v20 = vadd.f32 %v1374_v18, %v1373_v12  ;;  %v750_v25 = vmax.f32 %v630_v15, 0.0  ;;  %v766_v26 = vmax.f32 %v694_v16, 0.0 }
 0x12f   : > { %v1328_v21 = vpop.f32.mrf.mxu0  ;;  %v1376_v22 = vpop.f32.mrf.mxu1 }
 0x130   : > { %v633_v23 = vadd.f32 %v1327_v19, %v1904_v52  ;;  %v697_v24 = vadd.f32 %v1375_v20, %v1904_v52 }
 0x131   : > { %v1329_v27 = vpop.f32.mrf.mxu0  ;;  %v1377_v28 = vpop.f32.mrf.mxu1 }
 0x132   : > { %v751_v29 = vmax.f32 %v633_v23, 0.0  ;;  %v767_v30 = vmax.f32 %v697_v24, 0.0  ;;  %v1330_v31 = vadd.f32 %v1329_v27, %v1328_v21  ;;  %v1378_v32 = vadd.f32 %v1377_v28, %v1376_v22 }
 0x133   : > { %v1331_v33 = vpop.f32.mrf.mxu0  ;;  %v1379_v34 = vpop.f32.mrf.mxu1 }
 0x134   : > { %v1213_v35 = vpack.c.bf16 %v751_v29, %v750_v25  ;;  %v1253_v36 = vpack.c.bf16 %v767_v30, %v766_v26  ;;  %v638_v37 = vadd.f32 %v1330_v31, %v1904_v52  ;;  %v702_v38 = vadd.f32 %v1378_v32, %v1904_v52 }
 0x135   : > { %v1332_v39 = vpop.f32.mrf.mxu0  ;;  %v1380_v40 = vpop.f32.mrf.mxu1 }
 0x136   : > { %1285 = vst [vmem:[%s1913_s29 + $0x8] sm:$0xff] %v1213_v35   ;;  %1293 = vst [vmem:[%s1913_s29 + $0x48] sm:$0xff] %v1253_v36   ;;  %v1333_v41 = vadd.f32 %v1332_v39, %v1331_v33  ;;  %v1381_v42 = vadd.f32 %v1380_v40, %v1379_v34  ;;  %v752_v47 = vmax.f32 %v638_v37, 0.0  ;;  %v768_v48 = vmax.f32 %v702_v38, 0.0 }
 0x137   : > { %v1334_v43 = vpop.f32.mrf.mxu0  ;;  %v1382_v44 = vpop.f32.mrf.mxu1 }
 0x138   : > { %v641_v45 = vadd.f32 %v1333_v41, %v1904_v52  ;;  %v705_v46 = vadd.f32 %v1381_v42, %v1904_v52 }
 0x139   : > { %v1335_v49 = vpop.f32.mrf.mxu0  ;;  %v1383_v50 = vpop.f32.mrf.mxu1 }
 0x13a   : > { %v753_v51 = vmax.f32 %v641_v45, 0.0  ;;  %v769_v53 = vmax.f32 %v705_v46, 0.0  ;;  %v1336_v54 = vadd.f32 %v1335_v49, %v1334_v43  ;;  %v1384_v55 = vadd.f32 %v1383_v50, %v1382_v44 }
 0x13b   : > { %v1337_v56 = vpop.f32.mrf.mxu0  ;;  %v1385_v57 = vpop.f32.mrf.mxu1 }
 0x13c   : > { %v1218_v58 = vpack.c.bf16 %v753_v51, %v752_v47  ;;  %v1258_v59 = vpack.c.bf16 %v769_v53, %v768_v48  ;;  %v646_v60 = vadd.f32 %v1336_v54, %v1904_v52  ;;  %v710_v61 = vadd.f32 %v1384_v55, %v1904_v52 }
 0x13d   : > { %v1338_v62 = vpop.f32.mrf.mxu0  ;;  %v1386_v63 = vpop.f32.mrf.mxu1 }
 0x13e   : > { %1286 = vst [vmem:[%s1913_s29 + $0x10] sm:$0xff] %v1218_v58   ;;  %1294 = vst [vmem:[%s1913_s29 + $0x50] sm:$0xff] %v1258_v59   ;;  %v1339_v0 = vadd.f32 %v1338_v62, %v1337_v56  ;;  %v1387_v1 = vadd.f32 %v1386_v63, %v1385_v57  ;;  %v754_v6 = vmax.f32 %v646_v60, 0.0  ;;  %v770_v7 = vmax.f32 %v710_v61, 0.0 }
 0x13f   : > { %v1340_v2 = vpop.f32.mrf.mxu0  ;;  %v1388_v3 = vpop.f32.mrf.mxu1 }
 0x140   : > { %v649_v4 = vadd.f32 %v1339_v0, %v1904_v52  ;;  %v713_v5 = vadd.f32 %v1387_v1, %v1904_v52 }
 0x141   : > { %v1341_v8 = vpop.f32.mrf.mxu0  ;;  %v1389_v9 = vpop.f32.mrf.mxu1 }
 0x142   : > { %v755_v10 = vmax.f32 %v649_v4, 0.0  ;;  %v771_v11 = vmax.f32 %v713_v5, 0.0  ;;  %v1342_v12 = vadd.f32 %v1341_v8, %v1340_v2  ;;  %v1390_v13 = vadd.f32 %v1389_v9, %v1388_v3 }
 0x143   : > { %v1343_v14 = vpop.f32.mrf.mxu0  ;;  %v1391_v15 = vpop.f32.mrf.mxu1 }
 0x144   : > { %v1223_v16 = vpack.c.bf16 %v755_v10, %v754_v6  ;;  %v1263_v17 = vpack.c.bf16 %v771_v11, %v770_v7  ;;  %v654_v18 = vadd.f32 %v1342_v12, %v1904_v52  ;;  %v718_v19 = vadd.f32 %v1390_v13, %v1904_v52 }
 0x145   : > { %v1344_v20 = vpop.f32.mrf.mxu0  ;;  %v1392_v21 = vpop.f32.mrf.mxu1 }
 0x146   : > { %1287 = vst [vmem:[%s1913_s29 + $0x18] sm:$0xff] %v1223_v16   ;;  %1295 = vst [vmem:[%s1913_s29 + $0x58] sm:$0xff] %v1263_v17   ;;  %v1345_v22 = vadd.f32 %v1344_v20, %v1343_v14  ;;  %v1393_v23 = vadd.f32 %v1392_v21, %v1391_v15  ;;  %v756_v28 = vmax.f32 %v654_v18, 0.0  ;;  %v772_v29 = vmax.f32 %v718_v19, 0.0 }
 0x147   : > { %v1346_v24 = vpop.f32.mrf.mxu0  ;;  %v1394_v25 = vpop.f32.mrf.mxu1 }
 0x148   : > { %v657_v26 = vadd.f32 %v1345_v22, %v1904_v52  ;;  %v721_v27 = vadd.f32 %v1393_v23, %v1904_v52 }
 0x149   : > { %v1347_v30 = vpop.f32.mrf.mxu0  ;;  %v1395_v31 = vpop.f32.mrf.mxu1 }
 0x14a   : > { %v757_v32 = vmax.f32 %v657_v26, 0.0  ;;  %v773_v33 = vmax.f32 %v721_v27, 0.0  ;;  %v1348_v34 = vadd.f32 %v1347_v30, %v1346_v24  ;;  %v1396_v35 = vadd.f32 %v1395_v31, %v1394_v25 }
 0x14b   : > { %v1349_v36 = vpop.f32.mrf.mxu0  ;;  %v1397_v37 = vpop.f32.mrf.mxu1 }
 0x14c   : > { %v1228_v38 = vpack.c.bf16 %v757_v32, %v756_v28  ;;  %v1268_v39 = vpack.c.bf16 %v773_v33, %v772_v29  ;;  %v662_v40 = vadd.f32 %v1348_v34, %v1904_v52  ;;  %v726_v41 = vadd.f32 %v1396_v35, %v1904_v52 }
 0x14d   : > { %v1350_v42 = vpop.f32.mrf.mxu0  ;;  %v1398_v43 = vpop.f32.mrf.mxu1 }
 0x14e   : > { %1288 = vst [vmem:[%s1913_s29 + $0x20] sm:$0xff] %v1228_v38   ;;  %1296 = vst [vmem:[%s1913_s29 + $0x60] sm:$0xff] %v1268_v39   ;;  %v1351_v44 = vadd.f32 %v1350_v42, %v1349_v36  ;;  %v1399_v45 = vadd.f32 %v1398_v43, %v1397_v37  ;;  %v758_v50 = vmax.f32 %v662_v40, 0.0  ;;  %v774_v51 = vmax.f32 %v726_v41, 0.0 }
 0x14f   : > { %v1352_v46 = vpop.f32.mrf.mxu0  ;;  %v1400_v47 = vpop.f32.mrf.mxu1 }
 0x150   : > { %v665_v48 = vadd.f32 %v1351_v44, %v1904_v52  ;;  %v729_v49 = vadd.f32 %v1399_v45, %v1904_v52 }
 0x151   : > { %v1353_v53 = vpop.f32.mrf.mxu0  ;;  %v1401_v54 = vpop.f32.mrf.mxu1 }
 0x152   : > { %v759_v55 = vmax.f32 %v665_v48, 0.0  ;;  %v775_v56 = vmax.f32 %v729_v49, 0.0  ;;  %v1354_v57 = vadd.f32 %v1353_v53, %v1352_v46  ;;  %v1402_v58 = vadd.f32 %v1401_v54, %v1400_v47 }
 0x153   : > { %v1355_v59 = vpop.f32.mrf.mxu0  ;;  %v1403_v60 = vpop.f32.mrf.mxu1 }
 0x154   : > { %v1233_v61 = vpack.c.bf16 %v759_v55, %v758_v50  ;;  %v1273_v62 = vpack.c.bf16 %v775_v56, %v774_v51  ;;  %v670_v63 = vadd.f32 %v1354_v57, %v1904_v52  ;;  %v734_v0 = vadd.f32 %v1402_v58, %v1904_v52 }
 0x155   : > { %v1356_v1 = vpop.f32.mrf.mxu0  ;;  %v1404_v2 = vpop.f32.mrf.mxu1 }
 0x156   : > { %1289 = vst [vmem:[%s1913_s29 + $0x28] sm:$0xff] %v1233_v61   ;;  %1297 = vst [vmem:[%s1913_s29 + $0x68] sm:$0xff] %v1273_v62   ;;  %v1357_v3 = vadd.f32 %v1356_v1, %v1355_v59  ;;  %v1405_v4 = vadd.f32 %v1404_v2, %v1403_v60  ;;  %v760_v9 = vmax.f32 %v670_v63, 0.0  ;;  %v776_v10 = vmax.f32 %v734_v0, 0.0 }
 0x157   : > { %v1358_v5 = vpop.f32.mrf.mxu0  ;;  %v1406_v6 = vpop.f32.mrf.mxu1 }
 0x158   : > { %v673_v7 = vadd.f32 %v1357_v3, %v1904_v52  ;;  %v737_v8 = vadd.f32 %v1405_v4, %v1904_v52 }
 0x159   : > { %v1359_v11 = vpop.f32.mrf.mxu0  ;;  %v1407_v12 = vpop.f32.mrf.mxu1 }
 0x15a   : > { %v761_v13 = vmax.f32 %v673_v7, 0.0  ;;  %v777_v14 = vmax.f32 %v737_v8, 0.0  ;;  %v1360_v15 = vadd.f32 %v1359_v11, %v1358_v5  ;;  %v1408_v16 = vadd.f32 %v1407_v12, %v1406_v6 }
 0x15b   : > { %v1361_v17 = vpop.f32.mrf.mxu0  ;;  %v1409_v18 = vpop.f32.mrf.mxu1 }
 0x15c   : > { %v1238_v19 = vpack.c.bf16 %v761_v13, %v760_v9  ;;  %v1278_v20 = vpack.c.bf16 %v777_v14, %v776_v10  ;;  %v678_v23 = vadd.f32 %v1360_v15, %v1904_v52  ;;  %v742_v24 = vadd.f32 %v1408_v16, %v1904_v52 }
 0x15d   : > { %v1362_v21 = vpop.f32.mrf.mxu0  ;;  %v1410_v22 = vpop.f32.mrf.mxu1 }
 0x15e   : > { %1290 = vst [vmem:[%s1913_s29 + $0x30] sm:$0xff] %v1238_v19   ;;  %1298 = vst [vmem:[%s1913_s29 + $0x70] sm:$0xff] %v1278_v20   ;;  %v1363_v25 = vadd.f32 %v1362_v21, %v1361_v17  ;;  %v1411_v26 = vadd.f32 %v1410_v22, %v1409_v18  ;;  %v762_v29 = vmax.f32 %v678_v23, 0.0  ;;  %v778_v30 = vmax.f32 %v742_v24, 0.0 }
 0x160   : > { %v681_v27 = vadd.f32 %v1363_v25, %v1904_v52  ;;  %v745_v28 = vadd.f32 %v1411_v26, %v1904_v52 }
 0x162   : > { %v763_v31 = vmax.f32 %v681_v27, 0.0  ;;  %v779_v32 = vmax.f32 %v745_v28, 0.0 }
 0x164   : > { %v1243_v33 = vpack.c.bf16 %v763_v31, %v762_v29  ;;  %v1283_v34 = vpack.c.bf16 %v779_v32, %v778_v30 }
 0x166   : > { %1291 = vst [vmem:[%s1913_s29 + $0x38] sm:$0xff] %v1243_v33   ;;  %1299 = vst [vmem:[%s1913_s29 + $0x78] sm:$0xff] %v1283_v34  }
 0x167   : > { %1638 = shalt.err (!%p1635_p5)
}
 0x168   : > { %s1639_s26 = scalar_lea.hbm %s1960_s7, 2048  ;;  %s1643_s20 = scalar_lea.hbm %s2015_s3, 4096 }
 0x169   : > { %p1640_p7 = scmp.ne.s32.totalorder %s1960_s7, %s1639_s26  ;;  %p1644_p9 = scmp.lt.s32.totalorder %s1960_s7, %s2015_s3 }
 0x16a   : > { %p1645_p11 = scmp.lt.s32.totalorder %s1643_s20, %s1639_s26 }
 0x16b   : > { %p1641_p6 = pnand %p1640_p7, %p1827_p13 }
 0x16c   : > { %p1646_p12 = por %p1645_p11, %p1644_p9 }
 0x16d   : > { %p1642_p4 = pneg %p1641_p6 }
 0x16f   : > { %p1647_p1 = pnand %p1646_p12, %p1642_p4 }
 0x171   : > { %1650 = shalt.err (!%p1647_p1)
}
 0x172   : > { %s1718_s29 = smov 64   ;;  %s1719_s4 = smov 4  }
 0x173   : > { %1434 = dma.vmem_to_hbm [thread:$0]  (%p1827_p13), %s1962_s21, 2048, %s1960_s7, %s941_s15, %s1718_s29, %s1718_s29, %s1719_s4  }
 0x174 PF: > { %s970_s5 = sand.u32 1, %s1689_s12   ;;  %p2027_p8 = scmp.ne.s32.totalorder %s2020_s23, 0 }
 0x175   : > { %p2028_p10 = scmp.ge.s32.totalorder %s1709_s17, 2  ;;  %s971_s6 = scalar_lea.sflag [#allocation5], %s970_s5 }
 0x177   : > { %p1445_p0 = pnand %p2028_p10, %p2027_p8 }
 0x179   : > { %p1446_p2 = pneg %p1445_p0 }
 0x17b   : > { %1684 = dma.done.wait (%p1446_p2), %s971_s6, 2048  }
 0x17c   : > { %1686 = vsyncadd (%p1446_p2), %s971_s6, 4294965248  ;;  %s20_s17 = sadd.s32 1, %s1709_s17   ;;  %s2029_s12 = smov %s1693_s13 }
 0x17d   : > { %p17_p3 = scmp.ge.s32.totalorder %s20_s17, 4   ;;  %s2030_s13 = smov %s1697_s14 }
 0x17e   : > { %s2031_s14 = smov %s1836_s19  ;;  %s2032_s15 = smov %s1705_s16 }
 0x17f   : > { %s2033_s16 = smov %s2035_s28  ;;  %19 = sbr.rel (!%p17_p3) target bundleno = 7 (0x7), region = 85 }
 0x184   :  { %976 = vsyncpa [#allocation4], 1 }
 0x185   :  { %978 = vsyncpa [#allocation4 + $0x1], 1 }
 0x186   :  { %979 = vsyncpa [#allocation7], 1 }
 0x187   :  { %980 = vsyncpa [#allocation5], 1 }
 0x188   :  { %982 = vsyncpa [#allocation5 + $0x1], 1 }

</bundles_post_ra>
